<compile_context>
chip_gen: v6e
topology: v6e:2x2x1
jax: 0.10.0
libtpu: 0.0.40
codegen_flags: <defaults>
</compile_context>

<pallas_src>
import functools

import jax
import jax.numpy as jnp
from jax import lax
from jax.experimental import pallas as pl
from jax.experimental.pallas import tpu as pltpu

_EPS = 1e-5


def _round_up(n: int, m: int) -> int:
    return ((n + m - 1) // m) * m


def _pick_tile(full: int, target: int, align: int) -> int:
    """Largest tile <= target that divides `full` (full is a multiple of align)."""
    if full <= target:
        return full
    t = (target // align) * align
    while full % t != 0:
        t -= align
    return t


def _make_kernel(norm_mode: str, d_out: int, n_rows: int, d_out_pad: int,
                 rows_pad: int, single_k: bool):
    """Fused linear(+norm) kernel body.  All arguments are static Python values.

    Signatures (single_k=True -> no scratch accumulator, 2-D grid):
      "none":           (x, w, b, o[, acc])
      "layer"/"batch":  (x, w, b, gamma, beta, o[, acc])
    """
    mask_cols = norm_mode == "layer" and d_out_pad != d_out
    mask_rows = norm_mode == "batch" and rows_pad != n_rows

    def _normalize(y, g_ref, beta_ref):
        """y: (TM, TN) f32 with bias already added.  Returns normalized f32."""
        g = g_ref[...].astype(jnp.float32)
        beta = beta_ref[...].astype(jnp.float32)
        if norm_mode == "layer":
            # LayerNorm over the feature axis: the tile holds the full
            # (zero-padded) feature row, so row statistics are exact.
            if mask_cols:
                col = lax.broadcasted_iota(jnp.int32, y.shape, 1)
                valid = col < d_out
                mean = jnp.sum(jnp.where(valid, y, 0.0), axis=-1,
                               keepdims=True) * (1.0 / d_out)
                d = jnp.where(valid, y - mean, 0.0)
                var = jnp.sum(d * d, axis=-1, keepdims=True) * (1.0 / d_out)
            else:
                mean = jnp.mean(y, axis=-1, keepdims=True)
                d = y - mean
                var = jnp.mean(d * d, axis=-1, keepdims=True)
        else:  # "batch"
            # BatchNorm1d (training mode): stats over the batch axis; the tile
            # holds the full (zero-padded) batch, so column stats are exact.
            if mask_rows:
                row = lax.broadcasted_iota(jnp.int32, y.shape, 0)
                valid = row < n_rows
                mean = jnp.sum(jnp.where(valid, y, 0.0), axis=0,
                               keepdims=True) * (1.0 / n_rows)
                d = jnp.where(valid, y - mean, 0.0)
                var = jnp.sum(d * d, axis=0, keepdims=True) * (1.0 / n_rows)
            else:
                mean = jnp.mean(y, axis=0, keepdims=True)
                d = y - mean
                var = jnp.mean(d * d, axis=0, keepdims=True)
        return d * lax.rsqrt(var + _EPS) * g + beta

    # ---------------- single-K variants: no scratch, 2-D grid ----------------
    if single_k:
        if norm_mode == "none":

            def kernel(x_ref, w_ref, b_ref, o_ref):
                y = jnp.dot(x_ref[...], w_ref[...],
                            preferred_element_type=jnp.float32)
                y = y + b_ref[...].astype(jnp.float32)
                o_ref[...] = y.astype(o_ref.dtype)

            return kernel

        def kernel(x_ref, w_ref, b_ref, g_ref, beta_ref, o_ref):
            y = jnp.dot(x_ref[...], w_ref[...],
                        preferred_element_type=jnp.float32)
            y = y + b_ref[...].astype(jnp.float32)
            o_ref[...] = _normalize(y, g_ref, beta_ref).astype(o_ref.dtype)

        return kernel

    # ---------------- multi-K variants: f32 accumulator, 3-D grid ------------
    def _accumulate(x_ref, w_ref, acc_ref):
        @pl.when(pl.program_id(2) == 0)
        def _():
            acc_ref[...] = jnp.zeros_like(acc_ref)

        # Native-dtype operands straight into the MXU; f32 accumulation.
        acc_ref[...] += jnp.dot(x_ref[...], w_ref[...],
                                preferred_element_type=jnp.float32)

    if norm_mode == "none":

        def kernel(x_ref, w_ref, b_ref, o_ref, acc_ref):
            _accumulate(x_ref, w_ref, acc_ref)

            @pl.when(pl.program_id(2) == pl.num_programs(2) - 1)
            def _():
                y = acc_ref[...] + b_ref[...].astype(jnp.float32)
                o_ref[...] = y.astype(o_ref.dtype)

        return kernel

    def kernel(x_ref, w_ref, b_ref, g_ref, beta_ref, o_ref, acc_ref):
        _accumulate(x_ref, w_ref, acc_ref)

        @pl.when(pl.program_id(2) == pl.num_programs(2) - 1)
        def _():
            y = acc_ref[...] + b_ref[...].astype(jnp.float32)      # (TM, TN)
            o_ref[...] = _normalize(y, g_ref, beta_ref).astype(o_ref.dtype)

    return kernel


def prepare_decoder_params(weight, bias, gamma=None, beta=None):
    """One-time parameter prep (keep OUTSIDE the per-call jit path).

    weight: torch-layout (D_out, D_in); bias/gamma/beta: (D_out,).
    Returns lane-aligned, zero-padded params:
      w_t   (D_in_p, D_out_p)  transposed once; padding contributes 0 to the matmul
      b     (1, D_out_p)       padded with 0
      gamma (1, D_out_p)       padded with 1
      beta  (1, D_out_p)       padded with 0
    """
    d_out, d_in = weight.shape
    d_in_p = _round_up(d_in, 128)
    d_out_p = _round_up(d_out, 128)

    if gamma is None:
        gamma = jnp.ones((d_out,), weight.dtype)
    if beta is None:
        beta = jnp.zeros((d_out,), weight.dtype)

    w_t = jnp.zeros((d_in_p, d_out_p), weight.dtype).at[:d_in, :d_out].set(weight.T)
    b_p = jnp.zeros((1, d_out_p), bias.dtype).at[0, :d_out].set(bias)
    g_p = jnp.ones((1, d_out_p), gamma.dtype).at[0, :d_out].set(gamma)
    be_p = jnp.zeros((1, d_out_p), beta.dtype).at[0, :d_out].set(beta)
    return w_t, b_p, g_p, be_p


@functools.partial(jax.jit, static_argnames=("norm_mode", "d_out"))
def generic_decoder_forward(x, w_t, b, gamma, beta, *, norm_mode="none", d_out=None):
    """x: (B, D_in).  w_t/b/gamma/beta: outputs of prepare_decoder_params.

    norm_mode: "none" | "layer" (use_norm_last) | "batch" (use_bnorm_last).
    Returns (B, d_out) in x.dtype.
    """
    if norm_mode not in ("none", "layer", "batch"):
        raise ValueError(f"bad norm_mode: {norm_mode}")

    B, d_in = x.shape
    d_in_p, d_out_p = w_t.shape
    if d_out is None:
        d_out = d_out_p

    # --- static tile selection (a few MiB of VMEM -> safe on v5e/v6e/v7x) ---
    tk = _pick_tile(d_in_p, 512, 128)
    if norm_mode == "layer":
        tn = d_out_p                          # full feature row per tile (exact row stats)
    else:
        tn = _pick_tile(d_out_p, 256, 128)
    if norm_mode == "batch":
        b_pad = _round_up(B, 8)               # full batch per tile (exact column stats)
        tm = b_pad
    else:
        tm = min(256, _round_up(B, 8))
        b_pad = _round_up(B, tm)

    # Pad activations (zero rows / zero K-columns contribute nothing to the dot).
    x_p = x
    if (b_pad, d_in_p) != (B, d_in):
        x_p = jnp.pad(x, ((0, b_pad - B), (0, d_in_p - d_in)))

    gk = d_in_p // tk
    single_k = gk == 1

    kernel = _make_kernel(norm_mode, d_out, B, d_out_p, b_pad, single_k)

    if single_k:
        grid = (b_pad // tm, d_out_p // tn)
        x_spec = pl.BlockSpec((tm, tk), lambda i, j: (i, 0))
        w_spec = pl.BlockSpec((tk, tn), lambda i, j: (0, j))
        v_spec = pl.BlockSpec((1, tn), lambda i, j: (0, j))       # bias / gamma / beta
        o_spec = pl.BlockSpec((tm, tn), lambda i, j: (i, j))
        scratch = []
        dim_sem = ("parallel", "parallel")
    else:
        grid = (b_pad // tm, d_out_p // tn, gk)
        x_spec = pl.BlockSpec((tm, tk), lambda i, j, k: (i, k))
        w_spec = pl.BlockSpec((tk, tn), lambda i, j, k: (k, j))
        v_spec = pl.BlockSpec((1, tn), lambda i, j, k: (0, j))    # bias / gamma / beta
        o_spec = pl.BlockSpec((tm, tn), lambda i, j, k: (i, j))
        scratch = [pltpu.VMEM((tm, tn), jnp.float32)]
        dim_sem = ("parallel", "parallel", "arbitrary")

    if norm_mode == "none":
        in_specs = [x_spec, w_spec, v_spec]
        args = (x_p, w_t, b)
    else:
        in_specs = [x_spec, w_spec, v_spec, v_spec, v_spec]
        args = (x_p, w_t, b, gamma, beta)

    out = pl.pallas_call(
        kernel,
        out_shape=jax.ShapeDtypeStruct((b_pad, d_out_p), x.dtype),
        grid=grid,
        in_specs=in_specs,
        out_specs=o_spec,
        scratch_shapes=scratch,
        compiler_params=pltpu.CompilerParams(
            dimension_semantics=dim_sem,
            vmem_limit_bytes=32 * 1024 * 1024,
        ),
    )(*args)

    return out[:B, :d_out]


def _reference(x, weight, bias, gamma, beta, norm_mode):
    y = x.astype(jnp.float32) @ weight.T.astype(jnp.float32) + bias.astype(jnp.float32)
    if norm_mode == "layer":
        m = y.mean(-1, keepdims=True)
        v = ((y - m) ** 2).mean(-1, keepdims=True)
        y = (y - m) / jnp.sqrt(v + _EPS) * gamma + beta
    elif norm_mode == "batch":
        m = y.mean(0, keepdims=True)
        v = ((y - m) ** 2).mean(0, keepdims=True)
        y = (y - m) / jnp.sqrt(v + _EPS) * gamma + beta
    return y


if __name__ == "__main__":
    key = jax.random.PRNGKey(0)
    # Generic_Decoder(decoder=Identity, input_dim=32, out_dims=64); batch of 8 rows.
    B, D_IN, D_OUT = 8, 32, 64

    k_x, k_w, k_b = jax.random.split(key, 3)
    x = jax.random.normal(k_x, (B, D_IN), dtype=jnp.float32)

    # PyTorch-style Linear init: uniform(-1/sqrt(in), 1/sqrt(in))
    bound = 1.0 / jnp.sqrt(jnp.float32(D_IN))
    weight = jax.random.uniform(k_w, (D_OUT, D_IN), jnp.float32, -bound, bound)
    bias = jax.random.uniform(k_b, (D_OUT,), jnp.float32, -bound, bound)
    # Norm-layer affine params (PyTorch default init)
    gamma = jnp.ones((D_OUT,), jnp.float32)
    beta = jnp.zeros((D_OUT,), jnp.float32)

    # One-time param prep (weight transpose + lane-align padding) outside the hot path.
    w_t, b_p, g_p, be_p = prepare_decoder_params(weight, bias, gamma, beta)

    ok = True
    for mode in ("none", "layer", "batch"):
        out = generic_decoder_forward(x, w_t, b_p, g_p, be_p, norm_mode=mode, d_out=D_OUT)
        out = jax.block_until_ready(out)
        ref = _reference(x, weight, bias, gamma, beta, mode)
        ok = ok and bool(jnp.allclose(out, ref, atol=1e-4, rtol=1e-4))

    print("KERNEL_OK" if ok else "KERNEL_MISMATCH")
</pallas_src>

<mosaic_0001>
module attributes {stable_mosaic.version = 11 : i64} {
  func.func @kernel(%arg0: i32, %arg1: i32, %arg2: memref<8x128xf32, #tpu.memory_space<vmem>>, %arg3: memref<128x128xf32, #tpu.memory_space<vmem>>, %arg4: memref<1x128xf32, #tpu.memory_space<vmem>>, %arg5: memref<8x128xf32, #tpu.memory_space<vmem>>) attributes {dimension_semantics = [#tpu.dimension_semantics<parallel>, #tpu.dimension_semantics<parallel>], iteration_bounds = array<i64: 1, 1>, scalar_prefetch = 0 : i64, scratch_operands = 0 : i64, tpu.core_type = #tpu.core_type<tc>, window_params = [{transform_indices = @transform_0, window_bounds = array<i64: 8, 128>}, {transform_indices = @transform_1, window_bounds = array<i64: 128, 128>}, {transform_indices = @transform_2, window_bounds = array<i64: 1, 128>}, {transform_indices = @transform_3, window_bounds = array<i64: 8, 128>}]} {
    %c0 = arith.constant 0 : index
    %c0_0 = arith.constant 0 : index
    %0 = vector.load %arg2[%c0, %c0_0] : memref<8x128xf32, #tpu.memory_space<vmem>>, vector<8x128xf32>
    %c0_1 = arith.constant 0 : index
    %c0_2 = arith.constant 0 : index
    %1 = vector.load %arg3[%c0_1, %c0_2] : memref<128x128xf32, #tpu.memory_space<vmem>>, vector<128x128xf32>
    %cst = arith.constant dense<0.000000e+00> : vector<8x128xf32>
    %2 = tpu.matmul %0, %1, %cst {dimension_numbers = #tpu.dot_dimension_numbers<[1], [0], [0], [1], [0, 0, 1, 1], [], []>} : vector<8x128xf32>, vector<128x128xf32>, vector<8x128xf32> -> vector<8x128xf32>
    %c0_3 = arith.constant 0 : index
    %c0_4 = arith.constant 0 : index
    %3 = vector.load %arg4[%c0_3, %c0_4] : memref<1x128xf32, #tpu.memory_space<vmem>>, vector<1x128xf32>
    %4 = vector.broadcast %3 : vector<1x128xf32> to vector<8x128xf32>
    %5 = arith.addf %2, %4 : vector<8x128xf32>
    %c0_5 = arith.constant 0 : index
    %c0_6 = arith.constant 0 : index
    %6 = vector.load %arg5[%c0_5, %c0_6] : memref<8x128xf32, #tpu.memory_space<vmem>>, vector<8x128xf32>
    tpu.vector_store %arg5[%c0_5, %c0_6], %5 {strides = array<i32>} : memref<8x128xf32, #tpu.memory_space<vmem>>, vector<8x128xf32>,
    return
  }
  func.func @transform_0(%arg0: i32, %arg1: i32) -> (i32, i32) {
    %c0_i32 = arith.constant 0 : i32
    %c0_i32_0 = arith.constant 0 : i32
    return %arg0, %c0_i32 : i32, i32
  }
  func.func @transform_1(%arg0: i32, %arg1: i32) -> (i32, i32) {
    %c0_i32 = arith.constant 0 : i32
    %c0_i32_0 = arith.constant 0 : i32
    return %c0_i32, %arg1 : i32, i32
  }
  func.func @transform_2(%arg0: i32, %arg1: i32) -> (i32, i32) {
    %c0_i32 = arith.constant 0 : i32
    %c0_i32_0 = arith.constant 0 : i32
    return %c0_i32, %arg1 : i32, i32
  }
  func.func @transform_3(%arg0: i32, %arg1: i32) -> (i32, i32) {
    %c0_i32 = arith.constant 0 : i32
    return %arg0, %arg1 : i32, i32
  }
}

</mosaic_0001>

<bundles_post_ra>
// kernel: generic_decoder_forward.1
= control target key start
LH: loop header
LB: loop body
LE: loop exit
PB: predicated region body
PF: predicated region fallthrough
CT: control target
= control target key end

     0   :  { %8 = vsyncpa [#allocation3], 0  ;;  %s280_s0 = inlined_call_operand.vmem [shape: f32[8,128], index: 0, kind: input, shape index: {}]   ;;  %s281_s1 = inlined_call_operand.hbm [shape: f32[128,128], index: 1, kind: input, shape index: {}]   ;;  %s282_s2 = inlined_call_operand.vmem [shape: f32[1,128], index: 2, kind: input, shape index: {}]   ;;  %s283_s3 = inlined_call_operand.hbm [shape: f32[8,128], index: 3, kind: output, shape index: {}]  }
   0x1   :  { %9 = vsyncpa [#allocation4], 0  ;;  %s242_s12 = smov [#allocation2]  }
   0x2   :  { %s17_s13 = sshll.u32 %s242_s12, 4  ;;  %s18_s13 = int_to_ptr.vmem [resolvable:$true] %s17_s13 }
   0x3   :  { %s206_s14 = scalar_lea.vmem %s18_s13, 2048  ;;  %p211_p1 = scmp.lt.s32.totalorder %s18_s13, %s18_s13 }
   0x4   :  { %p207_p0 = scmp.ne.s32.totalorder %s18_s13, %s206_s14  ;;  %p212_p2 = scmp.lt.s32.totalorder %s206_s14, %s206_s14 }
   0x6   :  { %p213_p3 = por %p212_p2, %p211_p1 }
   0x8   :  { %p214_p4 = pnand %p213_p3, %p207_p0 }
   0xa   :  { %217 = shalt.err (!%p214_p4)
}
   0xb   :  { %s243_s15 = smov 128   ;;  %s244_s16 = smov 8  }
   0xc   :  { %23 = dma.hbm_to_vmem [thread:$0]  %s281_s1, 2048, %s18_s13, [#allocation3], %s243_s15, %s243_s15, %s244_s16  }
   0xd   :  { %238 = dma.done.wait [#allocation3], 2048  }
   0xe   :  { %239 = vsyncadd [#allocation3], 4294965248  ;;  %v245_v0 = vmov 0.0   ;;  %vm246_vm0 = vmmov 0   ;;  %v45_v1 = vld [vmem:[#allocation2 + $0x78] sm:$0xff]  ;;  %v44_v2 = vld [vmem:[#allocation2 + $0x70] sm:$0xff] }
   0xf   :  { %157 = vmatprep.subr.mxu0 %v245_v0  ;;  %189 = vmatprep.mubr.msk.f32.mxu0 %vm246_vm0, %v245_v0  ;;  %v43_v3 = vld [vmem:[#allocation2 + $0x68] sm:$0xff]  ;;  %v42_v4 = vld [vmem:[#allocation2 + $0x60] sm:$0xff]  ;;  %v41_v5 = vld [vmem:[#allocation2 + $0x58] sm:$0xff]  ;;  %s247_s22 = smov [#allocation5]  }
  0x10   :  { %158 = vmatpush3.msra.mxu0 %v45_v1  ;;  %v40_v6 = vld [vmem:[#allocation2 + $0x50] sm:$0xff]  ;;  %v39_v7 = vld [vmem:[#allocation2 + $0x48] sm:$0xff]  ;;  %v38_v8 = vld [vmem:[#allocation2 + $0x40] sm:$0xff]  ;;  %s130_s23 = sshll.u32 %s247_s22, 4  ;;  %s131_s23 = int_to_ptr.vmem [resolvable:$true] %s130_s23 }
  0x11   :  { %159 = vmatprep.subr.mxu0 %v245_v0  ;;  %v37_v9 = vld [vmem:[#allocation2 + $0x38] sm:$0xff]  ;;  %v36_v10 = vld [vmem:[#allocation2 + $0x30] sm:$0xff]  ;;  %v35_v11 = vld [vmem:[#allocation2 + $0x28] sm:$0xff]  ;;  %s218_s24 = scalar_lea.vmem %s131_s23, 128  ;;  %p223_p6 = scmp.lt.s32.totalorder %s131_s23, %s131_s23 }
  0x12   :  { %160 = vmatpush3.msra.mxu0 %v44_v2  ;;  %v34_v12 = vld [vmem:[#allocation2 + $0x20] sm:$0xff]  ;;  %v33_v13 = vld [vmem:[#allocation2 + $0x18] sm:$0xff]  ;;  %v32_v14 = vld [vmem:[#allocation2 + $0x10] sm:$0xff]  ;;  %p219_p5 = scmp.ne.s32.totalorder %s131_s23, %s218_s24  ;;  %p224_p7 = scmp.lt.s32.totalorder %s218_s24, %s218_s24 }
  0x13   :  { %161 = vmatprep.subr.mxu0 %v245_v0  ;;  %v31_v15 = vld [vmem:[#allocation2 + $0x8] sm:$0xff]  ;;  %v30_v16 = vld [vmem:[#allocation2] sm:$0xff] }
  0x14   :  { %162 = vmatpush3.msra.mxu0 %v43_v3  ;;  %v29_v17 = vld [vmem:[%s280_s0] sm:$0xff]  ;;  %p225_p8 = por %p224_p7, %p223_p6 }
  0x15   :  { %163 = vmatprep.subr.mxu0 %v245_v0  ;;  %v139_v18 = vld [vmem:[%s282_s2] ss:$0 sm:$0xff] }
  0x16   :  { %164 = vmatpush3.msra.mxu0 %v42_v4  ;;  %p226_p9 = pnand %p225_p8, %p219_p5 }
  0x17   :  { %165 = vmatprep.subr.mxu0 %v245_v0 }
  0x18   :  { %166 = vmatpush3.msra.mxu0 %v41_v5 }
  0x19   :  { %167 = vmatprep.subr.mxu0 %v245_v0 }
  0x1a   :  { %168 = vmatpush3.msra.mxu0 %v40_v6 }
  0x1b   :  { %169 = vmatprep.subr.mxu0 %v245_v0 }
  0x1c   :  { %170 = vmatpush3.msra.mxu0 %v39_v7 }
  0x1d   :  { %171 = vmatprep.subr.mxu0 %v245_v0 }
  0x1e   :  { %172 = vmatpush3.msra.mxu0 %v38_v8 }
  0x1f   :  { %173 = vmatprep.subr.mxu0 %v245_v0 }
  0x20   :  { %174 = vmatpush3.msra.mxu0 %v37_v9 }
  0x21   :  { %175 = vmatprep.subr.mxu0 %v245_v0 }
  0x22   :  { %176 = vmatpush3.msra.mxu0 %v36_v10 }
  0x23   :  { %177 = vmatprep.subr.mxu0 %v245_v0 }
  0x24   :  { %178 = vmatpush3.msra.mxu0 %v35_v11 }
  0x25   :  { %179 = vmatprep.subr.mxu0 %v245_v0 }
  0x26   :  { %180 = vmatpush3.msra.mxu0 %v34_v12 }
  0x27   :  { %181 = vmatprep.subr.mxu0 %v245_v0 }
  0x28   :  { %182 = vmatpush3.msra.mxu0 %v33_v13 }
  0x29   :  { %183 = vmatprep.subr.mxu0 %v245_v0 }
  0x2a   :  { %184 = vmatpush3.msra.mxu0 %v32_v14 }
  0x2b   :  { %185 = vmatprep.subr.mxu0 %v245_v0 }
  0x2c   :  { %186 = vmatpush3.msra.mxu0 %v31_v15 }
  0x2d   :  { %187 = vmatprep.subr.mxu0 %v245_v0 }
  0x2e   :  { %188 = vmatpush3.msra.mxu0 %v30_v16 }
  0x2f   :  { %190 = vmatmul.mubr.f32.vlgmr.msra.gmra.mxu0 %v29_v17 }
  0xef   :  { %v119_v19 = vpop.f32.mrf.mxu0 }
  0xf0   :  { %v120_v20 = vadd.f32 %v139_v18, %v119_v19 }
  0xf1   :  { %v191_v21 = vpop.f32.mrf.mxu0 }
  0xf2   :  { %123 = vst [vmem:[#allocation5] sm:$0xff] %v120_v20 }
  0xf3   :  { %229 = shalt.err (!%p226_p9)
}
  0xf4   :  { %133 = dma.vmem_to_hbm [thread:$0]  %s131_s23, 128, %s283_s3, [#allocation4]  }
  0xf5   :  { %240 = dma.done.wait [#allocation4], 128  }
  0xf6   :  { %241 = vsyncadd [#allocation4], 4294967168 }
  0xf7   :  { %137 = vsyncpa [#allocation3], 1 }
  0xf8   :  { %138 = vsyncpa [#allocation4], 1 }

</bundles_post_ra>
